<compile_context>
chip_gen: v7x
topology: tpu7x:2x2x1
jax: 0.10.0
libtpu: 0.0.40
codegen_flags: <defaults>
</compile_context>

<pallas_src>
import jax
import jax.numpy as jnp
from jax.experimental import pallas as pl
from jax.experimental.pallas import tpu as pltpu


# ---------------------------------------------------------------------------
# Kernel
# ---------------------------------------------------------------------------
def _double_conv_kernel(x_ref, w1_ref, sb1_ref, w2_ref, sb2_ref, o_ref,
                        xpad_ref, mid_ref):
    """Fused (conv3x3 + BN + ReLU) * 2 for one image per grid step.

    x_ref  : (1, H, W*Cin)        input image, rows flattened (lane-dense)
    w1_ref : (3, W*Cin, W*Cmid)   banded conv1 weights (one matrix per dh)
    sb1_ref: (2, W*Cmid)          row0 = tiled BN scale, row1 = tiled bias
    w2_ref : (3, W*Cmid, W*Cout)  banded conv2 weights
    sb2_ref: (2, W*Cout)
    o_ref  : (1, H, W*Cout)       output, rows flattened (lane-dense)
    xpad_ref: (H+2, W*Cin)        VMEM scratch, vertically zero-padded input
    mid_ref : (H+2, W*Cmid)       VMEM scratch, vertically zero-padded
                                  intermediate activation (never hits HBM)
    """
    H = x_ref.shape[1]

    # Zero the vertical halo rows (horizontal padding is folded into the
    # banded weights, so no lane-offset stores are ever needed).
    zx = jnp.zeros((1, xpad_ref.shape[1]), jnp.float32)
    xpad_ref[0:1, :] = zx
    xpad_ref[H + 1:H + 2, :] = zx
    zm = jnp.zeros((1, mid_ref.shape[1]), jnp.float32)
    mid_ref[0:1, :] = zm
    mid_ref[H + 1:H + 2, :] = zm

    # Interior of the padded input scratch.
    xpad_ref[1:H + 1, :] = x_ref[0, :, :]

    def band_conv_bn_relu(src_ref, w_ref, sb_ref):
        # 3 whole-image matmuls (one per vertical tap), f32 accumulation.
        acc = jnp.dot(src_ref[0:H, :], w_ref[0],
                      preferred_element_type=jnp.float32)
        acc = acc + jnp.dot(src_ref[1:H + 1, :], w_ref[1],
                            preferred_element_type=jnp.float32)
        acc = acc + jnp.dot(src_ref[2:H + 2, :], w_ref[2],
                            preferred_element_type=jnp.float32)
        scale = sb_ref[0, :]
        bias = sb_ref[1, :]
        return jnp.maximum(acc * scale[None, :] + bias[None, :], 0.0)

    # Layer 1 -> VMEM intermediate (vertically padded for layer 2).
    mid_ref[1:H + 1, :] = band_conv_bn_relu(xpad_ref, w1_ref, sb1_ref)
    # Layer 2 -> lane-dense output block.
    o_ref[0, :, :] = band_conv_bn_relu(mid_ref, w2_ref, sb2_ref).astype(
        o_ref.dtype)


# ---------------------------------------------------------------------------
# Host-side weight / BN preparation
# ---------------------------------------------------------------------------
def _banded_conv_weights(w_hwio, width):
    """Fold the 3 horizontal taps + horizontal zero-padding into 3 matrices.

    w_hwio: (3, 3, Cin, Cout)  ->  (3, width*Cin, width*Cout) where
    M[dh, wp*Cin+ci, w*Cout+co] = w_hwio[dh, wp-w+1, ci, co] if |wp-w| <= 1
    else 0.  Then conv row h = sum_dh xpad[h+dh, :] @ M[dh].
    """
    kh, kw, cin, cout = w_hwio.shape
    wp = jnp.arange(width)[:, None]          # input pixel index
    w = jnp.arange(width)[None, :]           # output pixel index
    dw = wp - w + 1                          # (width, width) tap index
    valid = (dw >= 0) & (dw < kw)
    dw_c = jnp.clip(dw, 0, kw - 1)
    taps = w_hwio[:, dw_c, :, :]             # (kh, width, width, cin, cout)
    taps = jnp.where(valid[None, :, :, None, None], taps, 0.0)
    taps = jnp.transpose(taps, (0, 1, 3, 2, 4))   # (kh, wp, cin, w, cout)
    return taps.reshape(kh, width * cin, width * cout)


def _fold_bn(conv_bias, gamma, beta, mean, var, eps=1e-5):
    """Fold conv bias + BatchNorm(eval) into per-channel scale/bias."""
    scale = gamma / jnp.sqrt(var + eps)
    bias = (conv_bias - mean) * scale + beta
    return scale, bias


# ---------------------------------------------------------------------------
# Public wrapper (NCHW in / NCHW out, like the PyTorch module)
# ---------------------------------------------------------------------------
@jax.jit
def double_conv(x_nchw, params):
    x = jnp.transpose(x_nchw, (0, 2, 3, 1))          # NCHW -> NHWC
    N, H, W, cin = x.shape
    cmid = params["w0"].shape[-1]
    cout = params["w1"].shape[-1]

    w1b = _banded_conv_weights(params["w0"], W)      # (3, W*cin,  W*cmid)
    w2b = _banded_conv_weights(params["w1"], W)      # (3, W*cmid, W*cout)

    s1, b1 = _fold_bn(params["b0"], params["gamma0"], params["beta0"],
                      params["mean0"], params["var0"])
    s2, b2 = _fold_bn(params["b1"], params["gamma1"], params["beta1"],
                      params["mean1"], params["var1"])
    sb1 = jnp.stack([jnp.tile(s1, W), jnp.tile(b1, W)], axis=0)  # (2, W*cmid)
    sb2 = jnp.stack([jnp.tile(s2, W), jnp.tile(b2, W)], axis=0)  # (2, W*cout)

    x_flat = x.reshape(N, H, W * cin)                # lane-dense rows

    out_flat = pl.pallas_call(
        _double_conv_kernel,
        out_shape=jax.ShapeDtypeStruct((N, H, W * cout), jnp.float32),
        grid_spec=pltpu.PrefetchScalarGridSpec(
            num_scalar_prefetch=0,
            grid=(N,),
            in_specs=[
                pl.BlockSpec((1, H, W * cin), lambda n: (n, 0, 0)),
                pl.BlockSpec((3, W * cin, W * cmid), lambda n: (0, 0, 0)),
                pl.BlockSpec((2, W * cmid), lambda n: (0, 0)),
                pl.BlockSpec((3, W * cmid, W * cout), lambda n: (0, 0, 0)),
                pl.BlockSpec((2, W * cout), lambda n: (0, 0)),
            ],
            out_specs=pl.BlockSpec((1, H, W * cout), lambda n: (n, 0, 0)),
            scratch_shapes=[
                pltpu.VMEM((H + 2, W * cin), jnp.float32),
                pltpu.VMEM((H + 2, W * cmid), jnp.float32),
            ],
        ),
        compiler_params=pltpu.CompilerParams(
            dimension_semantics=("parallel",)),
    )(x_flat, w1b, sb1, w2b, sb2)

    out = out_flat.reshape(N, H, W, cout)
    return jnp.transpose(out, (0, 3, 1, 2))          # NHWC -> NCHW


# ---------------------------------------------------------------------------
# Parameters / reference
# ---------------------------------------------------------------------------
def make_double_conv_params(key, in_channels, out_channels):
    """Deterministic synthetic parameters (same shapes as the nn.Module)."""
    ks = jax.random.split(key, 10)
    params = {}
    for i, (cin, cout) in enumerate([(in_channels, out_channels),
                                     (out_channels, out_channels)]):
        k = ks[5 * i: 5 * (i + 1)]
        fan_in = cin * 9
        bound = 1.0 / jnp.sqrt(fan_in)
        # PyTorch Conv2d weight layout is (Cout, Cin, 3, 3); store as HWIO.
        w_oihw = jax.random.uniform(k[0], (cout, cin, 3, 3),
                                    jnp.float32, -bound, bound)
        params[f"w{i}"] = jnp.transpose(w_oihw, (2, 3, 1, 0))  # (3,3,Cin,Cout)
        params[f"b{i}"] = jax.random.uniform(k[1], (cout,),
                                             jnp.float32, -bound, bound)
        params[f"gamma{i}"] = jax.random.uniform(k[2], (cout,),
                                                 jnp.float32, 0.5, 1.5)
        params[f"beta{i}"] = jax.random.normal(k[3], (cout,)) * 0.1
        params[f"mean{i}"] = jax.random.normal(k[4], (cout,)) * 0.1
        params[f"var{i}"] = jnp.abs(jax.random.normal(k[4] + 1, (cout,))) + 0.5
    return params


def _reference_double_conv(x_nchw, params):
    """Pure-JAX reference (lax conv) for correctness checking."""
    x = jnp.transpose(x_nchw, (0, 2, 3, 1))
    for i in range(2):
        y = jax.lax.conv_general_dilated(
            x, params[f"w{i}"], window_strides=(1, 1), padding="SAME",
            dimension_numbers=("NHWC", "HWIO", "NHWC"))
        scale, bias = _fold_bn(params[f"b{i}"], params[f"gamma{i}"],
                               params[f"beta{i}"], params[f"mean{i}"],
                               params[f"var{i}"])
        x = jnp.maximum(y * scale + bias, 0.0)
    return jnp.transpose(x, (0, 3, 1, 2))


if __name__ == "__main__":
    key = jax.random.PRNGKey(0)
    k_x, k_p = jax.random.split(key)

    N, C_IN, C_OUT, H, W = 2, 4, 8, 16, 16
    x = jax.random.normal(k_x, (N, C_IN, H, W), jnp.float32)
    params = make_double_conv_params(k_p, C_IN, C_OUT)

    out = double_conv(x, params)
    out = jax.block_until_ready(out)

    ref = _reference_double_conv(x, params)
    assert out.shape == (N, C_OUT, H, W), out.shape
    assert jnp.allclose(out, ref, atol=1e-4, rtol=1e-4), (
        float(jnp.max(jnp.abs(out - ref))))

    print("KERNEL_OK")
</pallas_src>

<mosaic_0001>
module attributes {stable_mosaic.version = 11 : i64} {
  func.func @_double_conv_kernel(%arg0: i32, %arg1: memref<1x16x64xf32, #tpu.memory_space<vmem>>, %arg2: memref<3x64x128xf32, #tpu.memory_space<vmem>>, %arg3: memref<2x128xf32, #tpu.memory_space<vmem>>, %arg4: memref<3x128x128xf32, #tpu.memory_space<vmem>>, %arg5: memref<2x128xf32, #tpu.memory_space<vmem>>, %arg6: memref<1x16x128xf32, #tpu.memory_space<vmem>>, %arg7: memref<18x64xf32, #tpu.memory_space<vmem>>, %arg8: memref<18x128xf32, #tpu.memory_space<vmem>>) attributes {dimension_semantics = [#tpu.dimension_semantics<parallel>], iteration_bounds = array<i64: 2>, scalar_prefetch = 0 : i64, scratch_operands = 2 : i64, tpu.core_type = #tpu.core_type<tc>, window_params = [{transform_indices = @transform_0, window_bounds = array<i64: 1, 16, 64>}, {pipeline_mode = #tpu.pipeline_mode<synchronous>, transform_indices = @transform_1, window_bounds = array<i64: 3, 64, 128>}, {pipeline_mode = #tpu.pipeline_mode<synchronous>, transform_indices = @transform_2, window_bounds = array<i64: 2, 128>}, {pipeline_mode = #tpu.pipeline_mode<synchronous>, transform_indices = @transform_3, window_bounds = array<i64: 3, 128, 128>}, {pipeline_mode = #tpu.pipeline_mode<synchronous>, transform_indices = @transform_4, window_bounds = array<i64: 2, 128>}, {transform_indices = @transform_5, window_bounds = array<i64: 1, 16, 128>}]} {
    %cst = arith.constant 0.000000e+00 : f32
    %0 = vector.broadcast %cst : f32 to vector<1x64xf32>
    %c0 = arith.constant 0 : index
    %c0_0 = arith.constant 0 : index
    %1 = vector.load %arg7[%c0, %c0_0] : memref<18x64xf32, #tpu.memory_space<vmem>>, vector<1x64xf32>
    tpu.vector_store %arg7[%c0, %c0_0], %0 {strides = array<i32>} : memref<18x64xf32, #tpu.memory_space<vmem>>, vector<1x64xf32>,
    %c17 = arith.constant 17 : index
    %c0_1 = arith.constant 0 : index
    %2 = vector.load %arg7[%c17, %c0_1] : memref<18x64xf32, #tpu.memory_space<vmem>>, vector<1x64xf32>
    tpu.vector_store %arg7[%c17, %c0_1], %0 {strides = array<i32>} : memref<18x64xf32, #tpu.memory_space<vmem>>, vector<1x64xf32>,
    %cst_2 = arith.constant 0.000000e+00 : f32
    %3 = vector.broadcast %cst_2 : f32 to vector<1x128xf32>
    %c0_3 = arith.constant 0 : index
    %c0_4 = arith.constant 0 : index
    %4 = vector.load %arg8[%c0_3, %c0_4] : memref<18x128xf32, #tpu.memory_space<vmem>>, vector<1x128xf32>
    tpu.vector_store %arg8[%c0_3, %c0_4], %3 {strides = array<i32>} : memref<18x128xf32, #tpu.memory_space<vmem>>, vector<1x128xf32>,
    %c17_5 = arith.constant 17 : index
    %c0_6 = arith.constant 0 : index
    %5 = vector.load %arg8[%c17_5, %c0_6] : memref<18x128xf32, #tpu.memory_space<vmem>>, vector<1x128xf32>
    tpu.vector_store %arg8[%c17_5, %c0_6], %3 {strides = array<i32>} : memref<18x128xf32, #tpu.memory_space<vmem>>, vector<1x128xf32>,
    %c0_7 = arith.constant 0 : index
    %c0_8 = arith.constant 0 : index
    %c0_9 = arith.constant 0 : index
    %6 = vector.load %arg1[%c0_7, %c0_8, %c0_9] : memref<1x16x64xf32, #tpu.memory_space<vmem>>, vector<1x16x64xf32>
    %7 = vector.shape_cast %6 : vector<1x16x64xf32> to vector<16x64xf32>
    %c1 = arith.constant 1 : index
    %c0_10 = arith.constant 0 : index
    %8 = vector.load %arg7[%c1, %c0_10] : memref<18x64xf32, #tpu.memory_space<vmem>>, vector<16x64xf32>
    tpu.vector_store %arg7[%c1, %c0_10], %7 {strides = array<i32>} : memref<18x64xf32, #tpu.memory_space<vmem>>, vector<16x64xf32>,
    %c0_11 = arith.constant 0 : index
    %c0_12 = arith.constant 0 : index
    %9 = vector.load %arg7[%c0_11, %c0_12] : memref<18x64xf32, #tpu.memory_space<vmem>>, vector<16x64xf32>
    %c0_13 = arith.constant 0 : index
    %c0_14 = arith.constant 0 : index
    %c0_15 = arith.constant 0 : index
    %10 = vector.load %arg2[%c0_13, %c0_14, %c0_15] : memref<3x64x128xf32, #tpu.memory_space<vmem>>, vector<1x64x128xf32>
    %11 = vector.shape_cast %10 : vector<1x64x128xf32> to vector<64x128xf32>
    %cst_16 = arith.constant dense<0.000000e+00> : vector<16x128xf32>
    %12 = tpu.matmul %9, %11, %cst_16 {dimension_numbers = #tpu.dot_dimension_numbers<[1], [0], [0], [1], [0, 0, 1, 1], [], []>} : vector<16x64xf32>, vector<64x128xf32>, vector<16x128xf32> -> vector<16x128xf32>
    %c1_17 = arith.constant 1 : index
    %c0_18 = arith.constant 0 : index
    %13 = vector.load %arg7[%c1_17, %c0_18] : memref<18x64xf32, #tpu.memory_space<vmem>>, vector<16x64xf32>
    %c1_19 = arith.constant 1 : index
    %c0_20 = arith.constant 0 : index
    %c0_21 = arith.constant 0 : index
    %14 = vector.load %arg2[%c1_19, %c0_20, %c0_21] : memref<3x64x128xf32, #tpu.memory_space<vmem>>, vector<1x64x128xf32>
    %15 = vector.shape_cast %14 : vector<1x64x128xf32> to vector<64x128xf32>
    %cst_22 = arith.constant dense<0.000000e+00> : vector<16x128xf32>
    %16 = tpu.matmul %13, %15, %cst_22 {dimension_numbers = #tpu.dot_dimension_numbers<[1], [0], [0], [1], [0, 0, 1, 1], [], []>} : vector<16x64xf32>, vector<64x128xf32>, vector<16x128xf32> -> vector<16x128xf32>
    %17 = arith.addf %12, %16 : vector<16x128xf32>
    %c2 = arith.constant 2 : index
    %c0_23 = arith.constant 0 : index
    %18 = vector.load %arg7[%c2, %c0_23] : memref<18x64xf32, #tpu.memory_space<vmem>>, vector<16x64xf32>
    %c2_24 = arith.constant 2 : index
    %c0_25 = arith.constant 0 : index
    %c0_26 = arith.constant 0 : index
    %19 = vector.load %arg2[%c2_24, %c0_25, %c0_26] : memref<3x64x128xf32, #tpu.memory_space<vmem>>, vector<1x64x128xf32>
    %20 = vector.shape_cast %19 : vector<1x64x128xf32> to vector<64x128xf32>
    %cst_27 = arith.constant dense<0.000000e+00> : vector<16x128xf32>
    %21 = tpu.matmul %18, %20, %cst_27 {dimension_numbers = #tpu.dot_dimension_numbers<[1], [0], [0], [1], [0, 0, 1, 1], [], []>} : vector<16x64xf32>, vector<64x128xf32>, vector<16x128xf32> -> vector<16x128xf32>
    %22 = arith.addf %17, %21 : vector<16x128xf32>
    %c0_28 = arith.constant 0 : index
    %c0_29 = arith.constant 0 : index
    %23 = vector.load %arg3[%c0_28, %c0_29] : memref<2x128xf32, #tpu.memory_space<vmem>>, vector<1x128xf32>
    %24 = vector.shape_cast %23 : vector<1x128xf32> to vector<128xf32>
    %c1_30 = arith.constant 1 : index
    %c0_31 = arith.constant 0 : index
    %25 = vector.load %arg3[%c1_30, %c0_31] : memref<2x128xf32, #tpu.memory_space<vmem>>, vector<1x128xf32>
    %26 = vector.shape_cast %25 : vector<1x128xf32> to vector<128xf32>
    %27 = vector.shape_cast %24 : vector<128xf32> to vector<1x128xf32>
    %28 = vector.broadcast %27 : vector<1x128xf32> to vector<16x128xf32>
    %29 = arith.mulf %22, %28 : vector<16x128xf32>
    %30 = vector.shape_cast %26 : vector<128xf32> to vector<1x128xf32>
    %31 = vector.broadcast %30 : vector<1x128xf32> to vector<16x128xf32>
    %32 = arith.addf %29, %31 : vector<16x128xf32>
    %cst_32 = arith.constant 0.000000e+00 : f32
    %33 = vector.broadcast %cst_32 : f32 to vector<16x128xf32>
    %34 = arith.maximumf %32, %33 : vector<16x128xf32>
    %c1_33 = arith.constant 1 : index
    %c0_34 = arith.constant 0 : index
    %35 = vector.load %arg8[%c1_33, %c0_34] : memref<18x128xf32, #tpu.memory_space<vmem>>, vector<16x128xf32>
    tpu.vector_store %arg8[%c1_33, %c0_34], %34 {strides = array<i32>} : memref<18x128xf32, #tpu.memory_space<vmem>>, vector<16x128xf32>,
    %c0_35 = arith.constant 0 : index
    %c0_36 = arith.constant 0 : index
    %36 = vector.load %arg8[%c0_35, %c0_36] : memref<18x128xf32, #tpu.memory_space<vmem>>, vector<16x128xf32>
    %c0_37 = arith.constant 0 : index
    %c0_38 = arith.constant 0 : index
    %c0_39 = arith.constant 0 : index
    %37 = vector.load %arg4[%c0_37, %c0_38, %c0_39] : memref<3x128x128xf32, #tpu.memory_space<vmem>>, vector<1x128x128xf32>
    %38 = vector.shape_cast %37 : vector<1x128x128xf32> to vector<128x128xf32>
    %cst_40 = arith.constant dense<0.000000e+00> : vector<16x128xf32>
    %39 = tpu.matmul %36, %38, %cst_40 {dimension_numbers = #tpu.dot_dimension_numbers<[1], [0], [0], [1], [0, 0, 1, 1], [], []>} : vector<16x128xf32>, vector<128x128xf32>, vector<16x128xf32> -> vector<16x128xf32>
    %c1_41 = arith.constant 1 : index
    %c0_42 = arith.constant 0 : index
    %40 = vector.load %arg8[%c1_41, %c0_42] : memref<18x128xf32, #tpu.memory_space<vmem>>, vector<16x128xf32>
    %c1_43 = arith.constant 1 : index
    %c0_44 = arith.constant 0 : index
    %c0_45 = arith.constant 0 : index
    %41 = vector.load %arg4[%c1_43, %c0_44, %c0_45] : memref<3x128x128xf32, #tpu.memory_space<vmem>>, vector<1x128x128xf32>
    %42 = vector.shape_cast %41 : vector<1x128x128xf32> to vector<128x128xf32>
    %cst_46 = arith.constant dense<0.000000e+00> : vector<16x128xf32>
    %43 = tpu.matmul %40, %42, %cst_46 {dimension_numbers = #tpu.dot_dimension_numbers<[1], [0], [0], [1], [0, 0, 1, 1], [], []>} : vector<16x128xf32>, vector<128x128xf32>, vector<16x128xf32> -> vector<16x128xf32>
    %44 = arith.addf %39, %43 : vector<16x128xf32>
    %c2_47 = arith.constant 2 : index
    %c0_48 = arith.constant 0 : index
    %45 = vector.load %arg8[%c2_47, %c0_48] : memref<18x128xf32, #tpu.memory_space<vmem>>, vector<16x128xf32>
    %c2_49 = arith.constant 2 : index
    %c0_50 = arith.constant 0 : index
    %c0_51 = arith.constant 0 : index
    %46 = vector.load %arg4[%c2_49, %c0_50, %c0_51] : memref<3x128x128xf32, #tpu.memory_space<vmem>>, vector<1x128x128xf32>
    %47 = vector.shape_cast %46 : vector<1x128x128xf32> to vector<128x128xf32>
    %cst_52 = arith.constant dense<0.000000e+00> : vector<16x128xf32>
    %48 = tpu.matmul %45, %47, %cst_52 {dimension_numbers = #tpu.dot_dimension_numbers<[1], [0], [0], [1], [0, 0, 1, 1], [], []>} : vector<16x128xf32>, vector<128x128xf32>, vector<16x128xf32> -> vector<16x128xf32>
    %49 = arith.addf %44, %48 : vector<16x128xf32>
    %c0_53 = arith.constant 0 : index
    %c0_54 = arith.constant 0 : index
    %50 = vector.load %arg5[%c0_53, %c0_54] : memref<2x128xf32, #tpu.memory_space<vmem>>, vector<1x128xf32>
    %51 = vector.shape_cast %50 : vector<1x128xf32> to vector<128xf32>
    %c1_55 = arith.constant 1 : index
    %c0_56 = arith.constant 0 : index
    %52 = vector.load %arg5[%c1_55, %c0_56] : memref<2x128xf32, #tpu.memory_space<vmem>>, vector<1x128xf32>
    %53 = vector.shape_cast %52 : vector<1x128xf32> to vector<128xf32>
    %54 = vector.shape_cast %51 : vector<128xf32> to vector<1x128xf32>
    %55 = vector.broadcast %54 : vector<1x128xf32> to vector<16x128xf32>
    %56 = arith.mulf %49, %55 : vector<16x128xf32>
    %57 = vector.shape_cast %53 : vector<128xf32> to vector<1x128xf32>
    %58 = vector.broadcast %57 : vector<1x128xf32> to vector<16x128xf32>
    %59 = arith.addf %56, %58 : vector<16x128xf32>
    %cst_57 = arith.constant 0.000000e+00 : f32
    %60 = vector.broadcast %cst_57 : f32 to vector<16x128xf32>
    %61 = arith.maximumf %59, %60 : vector<16x128xf32>
    %c0_58 = arith.constant 0 : index
    %c0_59 = arith.constant 0 : index
    %c0_60 = arith.constant 0 : index
    %62 = vector.load %arg6[%c0_58, %c0_59, %c0_60] : memref<1x16x128xf32, #tpu.memory_space<vmem>>, vector<1x16x128xf32>
    %63 = vector.shape_cast %62 : vector<1x16x128xf32> to vector<16x128xf32>
    %64 = vector.shape_cast %61 : vector<16x128xf32> to vector<1x16x128xf32>
    tpu.vector_store %arg6[%c0_58, %c0_59, %c0_60], %64 {strides = array<i32>} : memref<1x16x128xf32, #tpu.memory_space<vmem>>, vector<1x16x128xf32>,
    return
  }
  func.func @transform_0(%arg0: i32) -> (i32, i32, i32) {
    %c0_i32 = arith.constant 0 : i32
    %c0_i32_0 = arith.constant 0 : i32
    %c0_i32_1 = arith.constant 0 : i32
    return %arg0, %c0_i32, %c0_i32_0 : i32, i32, i32
  }
  func.func @transform_1(%arg0: i32) -> (i32, i32, i32) {
    %c0_i32 = arith.constant 0 : i32
    %c0_i32_0 = arith.constant 0 : i32
    %c0_i32_1 = arith.constant 0 : i32
    %c0_i32_2 = arith.constant 0 : i32
    return %c0_i32, %c0_i32_0, %c0_i32_1 : i32, i32, i32
  }
  func.func @transform_2(%arg0: i32) -> (i32, i32) {
    %c0_i32 = arith.constant 0 : i32
    %c0_i32_0 = arith.constant 0 : i32
    %c0_i32_1 = arith.constant 0 : i32
    return %c0_i32, %c0_i32_0 : i32, i32
  }
  func.func @transform_3(%arg0: i32) -> (i32, i32, i32) {
    %c0_i32 = arith.constant 0 : i32
    %c0_i32_0 = arith.constant 0 : i32
    %c0_i32_1 = arith.constant 0 : i32
    %c0_i32_2 = arith.constant 0 : i32
    return %c0_i32, %c0_i32_0, %c0_i32_1 : i32, i32, i32
  }
  func.func @transform_4(%arg0: i32) -> (i32, i32) {
    %c0_i32 = arith.constant 0 : i32
    %c0_i32_0 = arith.constant 0 : i32
    %c0_i32_1 = arith.constant 0 : i32
    return %c0_i32, %c0_i32_0 : i32, i32
  }
  func.func @transform_5(%arg0: i32) -> (i32, i32, i32) {
    %c0_i32 = arith.constant 0 : i32
    %c0_i32_0 = arith.constant 0 : i32
    %c0_i32_1 = arith.constant 0 : i32
    return %arg0, %c0_i32, %c0_i32_0 : i32, i32, i32
  }
}

</mosaic_0001>

<bundles_post_ra>
// kernel: tile.23
= control target key start
LH: loop header
LB: loop body
LE: loop exit
PB: predicated region body
PF: predicated region fallthrough
CT: control target
= control target key end

     0   :  { %s28_s0 = inlined_call_operand.vmem [shape: f32[8], index: 0, kind: input, shape index: {}]   ;;  %s29_s1 = inlined_call_operand.vmem [shape: f32[16,8], index: 1, kind: output, shape index: {}]  }
   0x1   :  { %v4_v0 = vld [vmem:[%s28_s0] ss:$0 sm:$0xff] }
   0x2   :  { %5 = vst [vmem:[%s29_s1] sm:$0xff] %v4_v0  ;;  %8 = vst [vmem:[%s29_s1 + $0x8] sm:$0xff] %v4_v0 }

// kernel: tile.28
= control target key start
LH: loop header
LB: loop body
LE: loop exit
PB: predicated region body
PF: predicated region fallthrough
CT: control target
= control target key end

     0   :  { %s131_s10 = smov 120   ;;  %s132_s11 = smov 104   ;;  %vm3_vm0 = vcmask 64512   ;;  %vm9_vm1 = vcmask 1048512   ;;  %vm15_vm2 = vcmask 982912   ;;  %vm21_vm3 = vcmask 917312   ;;  %s207_s0 = inlined_call_operand.vmem [shape: f32[16,8], index: 0, kind: input, shape index: {}]   ;;  %s208_s1 = inlined_call_operand.vmem [shape: f32[1,128], index: 1, kind: output, shape index: {}]  }
   0x1   :  { %v101_v0 = vld [vmem:[%s207_s0 + $0xf] sm:$0x1]   ;;  %v103_v1 = vld [vmem:[%s207_s0 + $0xd] sm:$0x1]   ;;  %v102_v2 = vld [vmem:[%s207_s0 + $0xe] sm:$0x1]  }
   0x2   :  { %7 = vrot.lane.b32.xlu0 %v101_v0, %s131_s10  ;;  %19 = vrot.lane.b32.xlu1 %v103_v1, %s132_s11  ;;  %v104_v3 = vld [vmem:[%s207_s0 + $0xc] sm:$0x1]   ;;  %s133_s16 = smov 112   ;;  %s134_s17 = smov 96   ;;  %v105_v4 = vld [vmem:[%s207_s0 + $0xb] sm:$0x1]  }
   0x3   :  { %v106_v5 = vld [vmem:[%s207_s0 + $0xa] sm:$0x1]   ;;  %v2_v6 = vld [vmem:[%s207_s0] sm:$0x1]   ;;  %s135_s24 = smov 88   ;;  %s136_s25 = smov 80  }
   0x4   :  { %4 = vst.msk [vmem:[#allocation0] sm:$0x1] %vm3_vm0, %v2_v6   ;;  %v107_v7 = vld [vmem:[%s207_s0 + $0x9] sm:$0x1]   ;;  %v108_v8 = vld [vmem:[%s207_s0 + $0x8] sm:$0x1]  }
   0x5   :  { %s137_s30 = smov 72   ;;  %s138_s2 = smov 64   ;;  %v109_v9 = vld [vmem:[%s207_s0 + $0x7] sm:$0x1]   ;;  %v110_v10 = vld [vmem:[%s207_s0 + $0x6] sm:$0x1]  }
   0x6   :  { %13 = vrot.lane.b32.xlu0 %v102_v2, %s133_s16  ;;  %25 = vrot.lane.b32.xlu1 %v104_v3, %s134_s17  ;;  %s139_s7 = smov 56   ;;  %s140_s8 = smov 48   ;;  %v111_v11 = vld [vmem:[%s207_s0 + $0x5] sm:$0x1]   ;;  %v112_v12 = vld [vmem:[%s207_s0 + $0x4] sm:$0x1]  }
   0x7   :  { %s141_s13 = smov 40   ;;  %s142_s14 = smov 32   ;;  %v113_v13 = vld [vmem:[%s207_s0 + $0x3] sm:$0x1]   ;;  %v114_v14 = vld [vmem:[%s207_s0 + $0x2] sm:$0x1]  }
   0x8   :  { %s143_s19 = smov 24   ;;  %s144_s20 = smov 16   ;;  %v115_v15 = vld [vmem:[%s207_s0 + $0x1] sm:$0x1]   ;;  %vm27_vm4 = vcmask 851712   ;;  %vm33_vm5 = vcmask 786112  }
   0x9   :  { %s145_s0 = smov 8   ;;  %vm39_vm6 = vcmask 720512   ;;  %vm45_vm7 = vcmask 654912   ;;  %vm51_vm8 = vcmask 589312   ;;  %vm57_vm9 = vcmask 523712  }
   0xa   :  { %31 = vrot.lane.b32.xlu0 %v105_v4, %s135_s24  ;;  %37 = vrot.lane.b32.xlu1 %v106_v5, %s136_s25  ;;  %vm63_vm10 = vcmask 458112   ;;  %vm69_vm11 = vcmask 392512   ;;  %vm75_vm12 = vcmask 326912   ;;  %vm81_vm13 = vcmask 261312  }
   0xb   :  { %vm87_vm14 = vcmask 195712   ;;  %vm93_vm15 = vcmask 130112  }
   0xe   :  { %43 = vrot.lane.b32.xlu0 %v107_v7, %s137_s30  ;;  %49 = vrot.lane.b32.xlu1 %v108_v8, %s138_s2 }
  0x12   :  { %55 = vrot.lane.b32.xlu0 %v109_v9, %s139_s7  ;;  %61 = vrot.lane.b32.xlu1 %v110_v10, %s140_s8 }
  0x16   :  { %67 = vrot.lane.b32.xlu0 %v111_v11, %s141_s13  ;;  %73 = vrot.lane.b32.xlu1 %v112_v12, %s142_s14 }
  0x1a   :  { %79 = vrot.lane.b32.xlu0 %v113_v13, %s143_s19  ;;  %85 = vrot.lane.b32.xlu1 %v114_v14, %s144_s20 }
  0x1e   :  { %91 = vrot.lane.b32.xlu0 %v115_v15, %s145_s0 }
  0x74   :  { %v8_v16 = vpop.permute.xlu0 %7   ;;  %v20_v17 = vpop.permute.xlu1 %19  }
  0x75   :  { %10 = vst.msk [vmem:[#allocation0] sm:$0x1] %vm9_vm1, %v8_v16  }
  0x78   :  { %v14_v18 = vpop.permute.xlu0 %13   ;;  %v26_v19 = vpop.permute.xlu1 %25  }
  0x79   :  { %16 = vst.msk [vmem:[#allocation0] sm:$0x1] %vm15_vm2, %v14_v18  }
  0x7a   :  { %22 = vst.msk [vmem:[#allocation0] sm:$0x1] %vm21_vm3, %v20_v17  }
  0x7b   :  { %28 = vst.msk [vmem:[#allocation0] sm:$0x1] %vm27_vm4, %v26_v19  }
  0x7c   :  { %v32_v20 = vpop.permute.xlu0 %31   ;;  %v38_v21 = vpop.permute.xlu1 %37  }
  0x7d   :  { %34 = vst.msk [vmem:[#allocation0] sm:$0x1] %vm33_vm5, %v32_v20  }
  0x7e   :  { %40 = vst.msk [vmem:[#allocation0] sm:$0x1] %vm39_vm6, %v38_v21  }
  0x80   :  { %v44_v22 = vpop.permute.xlu0 %43   ;;  %v50_v23 = vpop.permute.xlu1 %49  }
  0x81   :  { %46 = vst.msk [vmem:[#allocation0] sm:$0x1] %vm45_vm7, %v44_v22  }
  0x82   :  { %52 = vst.msk [vmem:[#allocation0] sm:$0x1] %vm51_vm8, %v50_v23  }
  0x84   :  { %v56_v24 = vpop.permute.xlu0 %55   ;;  %v62_v25 = vpop.permute.xlu1 %61  }
  0x85   :  { %58 = vst.msk [vmem:[#allocation0] sm:$0x1] %vm57_vm9, %v56_v24  }
  0x86   :  { %64 = vst.msk [vmem:[#allocation0] sm:$0x1] %vm63_vm10, %v62_v25  }
  0x88   :  { %v68_v26 = vpop.permute.xlu0 %67   ;;  %v74_v27 = vpop.permute.xlu1 %73  }
  0x89   :  { %70 = vst.msk [vmem:[#allocation0] sm:$0x1] %vm69_vm11, %v68_v26  }
  0x8a   :  { %76 = vst.msk [vmem:[#allocation0] sm:$0x1] %vm75_vm12, %v74_v27  }
  0x8c   :  { %v80_v28 = vpop.permute.xlu0 %79   ;;  %v86_v29 = vpop.permute.xlu1 %85  }
  0x8d   :  { %82 = vst.msk [vmem:[#allocation0] sm:$0x1] %vm81_vm13, %v80_v28  }
  0x8e   :  { %88 = vst.msk [vmem:[#allocation0] sm:$0x1] %vm87_vm14, %v86_v29  }
  0x90   :  { %v92_v30 = vpop.permute.xlu0 %91  }
  0x91   :  { %94 = vst.msk [vmem:[#allocation0] sm:$0x1] %vm93_vm15, %v92_v30  }
  0x98   :  { %v98_v31 = vld [vmem:[#allocation0] sm:$0x1] }
  0x99   :  { %100 = vst [vmem:[%s208_s1] sm:$0x1] %v98_v31 }

// kernel: double_conv.1
= control target key start
LH: loop header
LB: loop body
LE: loop exit
PB: predicated region body
PF: predicated region fallthrough
CT: control target
= control target key end

     0   :  { %s1403_s18 = smov 0   ;;  %s1663_s0 = inlined_call_operand.vmem [shape: f32[2,16,64], index: 0, kind: input, shape index: {}]   ;;  %s1664_s1 = inlined_call_operand.vmem [shape: f32[3,64,128], index: 1, kind: input, shape index: {}]   ;;  %s1665_s2 = inlined_call_operand.vmem [shape: f32[2,128], index: 2, kind: input, shape index: {}]   ;;  %s1666_s3 = inlined_call_operand.vmem [shape: f32[3,128,128], index: 3, kind: input, shape index: {}]   ;;  %s1667_s4 = inlined_call_operand.vmem [shape: f32[2,128], index: 4, kind: input, shape index: {}]   ;;  %s1668_s5 = inlined_call_operand.vmem [shape: f32[2,16,128], index: 5, kind: output, shape index: {}]  }
   0x1 LB: > { %s886_s19 = sadd.s32 4294967295, %s1370_s18   ;;  %p890_p0 = scmp.ge.s32.totalorder %s1370_s18, 1  ;;  %s1370_s18 = sphi %s1403_s18, %s15_s18  }
   0x2   : > { %p187_p1 = scmp.lt.s32.totalorder %s1370_s18, 3 }
   0x4   : > { %p188_p2 = pnand %p890_p0, %p187_p1 }
   0x5   : > { %v895_v0 = vld [vmem:[%s1664_s1 + $0x40] sm:$0xff] (!%p188_p2)  ;;  %v896_v1 = vld [vmem:[%s1664_s1 + $0x48] sm:$0xff] (!%p188_p2)  ;;  %v897_v2 = vld [vmem:[%s1664_s1 + $0x50] sm:$0xff] (!%p188_p2)  ;;  %p215_p3 = scmp.lt.s32.totalorder (!%p188_p2), %s886_s19, 1  ;;  %vm225_vm0 = vcmask (!%p188_p2), 516096   ;;  %v1372_v8 = vmov (!%p188_p2), 0.0  }
   0x6   : > { %191 = sbr.rel (%p188_p2) target bundleno = 540 (0x21c), region = 40  ;;  %v1203_v3 = vpack.c.bf16 (!%p188_p2), %v896_v1, %v895_v0  ;;  %v898_v4 = vld [vmem:[%s1664_s1 + $0x58] sm:$0xff] (!%p188_p2)  ;;  %v899_v6 = vld [vmem:[%s1664_s1 + $0x60] sm:$0xff] (!%p188_p2)  ;;  %v900_v7 = vld [vmem:[%s1664_s1 + $0x68] sm:$0xff] (!%p188_p2)  ;;  %226 = vst.msk [vmem:[#allocation2] sm:$0x1] (!%p188_p2), %vm225_vm0, %v1372_v8 }
   0x7   : > { %v1207_v5 = vpack.c.bf16 (!%p188_p2), %v898_v4, %v897_v2  ;;  %227 = vst.msk [vmem:[#allocation2 + $0x11] sm:$0x1] (!%p188_p2), %vm225_vm0, %v1372_v8  ;;  %228 = vst [vmem:[#allocation3] sm:$0x1] (!%p188_p2), %v1372_v8  ;;  %vm232_vm1 = vcmask (!%p188_p2), 523264   ;;  %v1211_v9 = vpack.c.bf16 (!%p188_p2), %v900_v7, %v899_v6  ;;  %v901_v10 = vld [vmem:[%s1664_s1 + $0x70] sm:$0xff] (!%p188_p2) }
   0x8   : > { %229 = vst [vmem:[#allocation3 + $0x11] sm:$0x1] (!%p188_p2), %v1372_v8  ;;  %1204 = vmatprep.subr.bf16.mxu0 (!%p188_p2), %v1203_v3  ;;  %v902_v11 = vld [vmem:[%s1664_s1 + $0x78] sm:$0xff] (!%p188_p2)  ;;  %v532_v14 = vld [vmem:[%s1666_s3] sm:$0xff] (!%p188_p2)  ;;  %v533_v17 = vld [vmem:[%s1666_s3 + $0x8] sm:$0xff] (!%p188_p2) }
   0x9   : > { %1206 = vmatpush3.bf16.msra.mxu0 (!%p188_p2), %v1203_v3  ;;  %v1215_v15 = vpack.c.bf16 (!%p188_p2), %v902_v11, %v901_v10  ;;  %v237_v16 = vld [vmem:[%s1664_s1] sm:$0xff] (!%p188_p2)  ;;  %v238_v18 = vld [vmem:[%s1664_s1 + $0x8] sm:$0xff] (!%p188_p2)  ;;  %v1283_v19 = vpack.c.bf16 (!%p188_p2), %v533_v17, %v532_v14  ;;  %v534_v20 = vld [vmem:[%s1666_s3 + $0x10] sm:$0xff] (!%p188_p2) }
   0xa   : > { %1208 = vmatprep.subr.bf16.mxu0 (!%p188_p2), %v1207_v5  ;;  %v535_v21 = vld [vmem:[%s1666_s3 + $0x18] sm:$0xff] (!%p188_p2)  ;;  %v536_v23 = vld [vmem:[%s1666_s3 + $0x20] sm:$0xff] (!%p188_p2)  ;;  %v537_v24 = vld [vmem:[%s1666_s3 + $0x28] sm:$0xff] (!%p188_p2)  ;;  %v1219_v25 = vpack.c.bf16 (!%p188_p2), %v238_v18, %v237_v16 }
   0xb   : > { %v1287_v22 = vpack.c.bf16 (!%p188_p2), %v535_v21, %v534_v20  ;;  %1284 = vmatprep.subr.bf16.mxu1 (!%p188_p2), %v1283_v19  ;;  %v239_v27 = vld [vmem:[%s1664_s1 + $0x10] sm:$0xff] (!%p188_p2)  ;;  %v240_v28 = vld [vmem:[%s1664_s1 + $0x18] sm:$0xff] (!%p188_p2)  ;;  %v1291_v29 = vpack.c.bf16 (!%p188_p2), %v537_v24, %v536_v23  ;;  %v241_v35 = vld [vmem:[%s1664_s1 + $0x20] sm:$0xff] (!%p188_p2) }
   0xc   : > { %1286 = vmatpush3.bf16.msra.mxu1 (!%p188_p2), %v1283_v19  ;;  %v538_v30 = vld [vmem:[%s1666_s3 + $0x30] sm:$0xff] (!%p188_p2)  ;;  %v539_v31 = vld [vmem:[%s1666_s3 + $0x38] sm:$0xff] (!%p188_p2)  ;;  %v1223_v33 = vpack.c.bf16 (!%p188_p2), %v240_v28, %v239_v27  ;;  %v242_v36 = vld [vmem:[%s1664_s1 + $0x28] sm:$0xff] (!%p188_p2) }
   0xd   : > { %s1670_s19 = smov (!%p215_p3, %s886_s19), 1  ;;  %1210 = vmatpush3.bf16.msra.mxu0 %v1207_v5  ;;  %1288 = vmatprep.subr.bf16.mxu1 %v1287_v22  ;;  %v1295_v37 = vpack.c.bf16 %v539_v31, %v538_v30  ;;  %v1227_v38 = vpack.c.bf16 %v242_v36, %v241_v35  ;;  %v243_v39 = vld [vmem:[%s1664_s1 + $0x30] sm:$0xff]  ;;  %v244_v40 = vld [vmem:[%s1664_s1 + $0x38] sm:$0xff]  ;;  %v907_v42 = vld [vmem:[%s1664_s1 + $0x80] sm:$0xff] }
   0xe   : > { %s955_s7 = sshll.u32 %s1670_s19, 4  ;;  %1212 = vmatprep.subr.bf16.mxu0 %v1211_v9  ;;  %v1231_v41 = vpack.c.bf16 %v244_v40, %v243_v39  ;;  %v908_v43 = vld [vmem:[%s1664_s1 + $0x88] sm:$0xff]  ;;  %v909_v45 = vld [vmem:[%s1664_s1 + $0x90] sm:$0xff]  ;;  %v910_v46 = vld [vmem:[%s1664_s1 + $0x98] sm:$0xff] }
   0xf   : > { %s219_s12 = scalar_lea.vmem %s1663_s0, %s955_s7  ;;  %v1235_v44 = vpack.c.bf16 %v908_v43, %v907_v42  ;;  %v1239_v48 = vpack.c.bf16 %v910_v46, %v909_v45  ;;  %v911_v50 = vld [vmem:[%s1664_s1 + $0xa0] sm:$0xff]  ;;  %v912_v51 = vld [vmem:[%s1664_s1 + $0xa8] sm:$0xff]  ;;  %v913_v53 = vld [vmem:[%s1664_s1 + $0xb0] sm:$0xff]  ;;  %s224_s23 = scalar_lea.vmem %s1668_s5, %s955_s7 }
  0x10   : > { %v230_v12 = vld [vmem:[%s219_s12] sm:$0xff]  ;;  %v231_v13 = vld [vmem:[%s219_s12 + $0x8] sm:$0xff]  ;;  %1290 = vmatpush3.bf16.msra.mxu1 %v1287_v22  ;;  %v1243_v52 = vpack.c.bf16 %v912_v51, %v911_v50  ;;  %v914_v54 = vld [vmem:[%s1664_s1 + $0xb8] sm:$0xff] }
  0x11   : > { %233 = vst.msk [vmem:[#allocation2 + $0x1] sm:$0xff] %vm232_vm1, %v230_v12  ;;  %234 = vst.msk [vmem:[#allocation2 + $0x9] sm:$0xff] %vm232_vm1, %v231_v13  ;;  %1214 = vmatpush3.bf16.msra.mxu0 %v1211_v9  ;;  %1292 = vmatprep.subr.bf16.mxu1 %v1291_v29  ;;  %v1247_v55 = vpack.c.bf16 %v914_v54, %v913_v53  ;;  %v919_v56 = vld [vmem:[%s1666_s3 + $0x80] sm:$0xff]  ;;  %v920_v57 = vld [vmem:[%s1666_s3 + $0x88] sm:$0xff] }
  0x12   : > { %1216 = vmatprep.subr.bf16.mxu0 %v1215_v15  ;;  %v1251_v58 = vpack.c.bf16 %v920_v57, %v919_v56  ;;  %v921_v59 = vld [vmem:[%s1666_s3 + $0x90] sm:$0xff]  ;;  %v922_v60 = vld [vmem:[%s1666_s3 + $0x98] sm:$0xff]  ;;  %v923_v63 = vld [vmem:[%s1666_s3 + $0xa0] sm:$0xff] }
  0x13   : > { %v1255_v62 = vpack.c.bf16 %v922_v60, %v921_v59  ;;  %v924_v0 = vld [vmem:[%s1666_s3 + $0xa8] sm:$0xff]  ;;  %v925_v2 = vld [vmem:[%s1666_s3 + $0xb0] sm:$0xff]  ;;  %v926_v3 = vld [vmem:[%s1666_s3 + $0xb8] sm:$0xff] }
  0x14   : > { %1294 = vmatpush3.bf16.msra.mxu1 %v1291_v29  ;;  %v1259_v1 = vpack.c.bf16 %v924_v0, %v923_v63  ;;  %v1263_v4 = vpack.c.bf16 %v926_v3, %v925_v2  ;;  %v927_v5 = vld [vmem:[%s1666_s3 + $0xc0] sm:$0xff]  ;;  %v928_v6 = vld [vmem:[%s1666_s3 + $0xc8] sm:$0xff]  ;;  %v929_v8 = vld [vmem:[%s1666_s3 + $0xd0] sm:$0xff] }
  0x15   : > { %1218 = vmatpush3.bf16.msra.mxu0 %v1215_v15  ;;  %1296 = vmatprep.subr.bf16.mxu1 %v1295_v37  ;;  %v1267_v7 = vpack.c.bf16 %v928_v6, %v927_v5  ;;  %v930_v9 = vld [vmem:[%s1666_s3 + $0xd8] sm:$0xff]  ;;  %v540_v11 = vld [vmem:[%s1666_s3 + $0x40] sm:$0xff]  ;;  %v541_v12 = vld [vmem:[%s1666_s3 + $0x48] sm:$0xff] }
  0x16   : > { %1220 = vmatprep.subr.bf16.mxu0 %v1219_v25  ;;  %v1271_v10 = vpack.c.bf16 %v930_v9, %v929_v8  ;;  %v1299_v13 = vpack.c.bf16 %v541_v12, %v540_v11  ;;  %v931_v14 = vld [vmem:[%s1666_s3 + $0xe0] sm:$0xff]  ;;  %v932_v15 = vld [vmem:[%s1666_s3 + $0xe8] sm:$0xff]  ;;  %v542_v17 = vld [vmem:[%s1666_s3 + $0x50] sm:$0xff] }
  0x17   : > { %v1275_v16 = vpack.c.bf16 %v932_v15, %v931_v14  ;;  %v543_v18 = vld [vmem:[%s1666_s3 + $0x58] sm:$0xff]  ;;  %v933_v20 = vld [vmem:[%s1666_s3 + $0xf0] sm:$0xff]  ;;  %v544_v23 = vld [vmem:[%s1666_s3 + $0x60] sm:$0xff] }
  0x18   : > { %v245_v26 = vld [vmem:[#allocation2 + $0x1] sm:$0xff]  ;;  %v246_v32 = vld [vmem:[#allocation2 + $0x9] sm:$0xff]  ;;  %1298 = vmatpush3.bf16.msra.mxu1 %v1295_v37  ;;  %v1303_v19 = vpack.c.bf16 %v543_v18, %v542_v17  ;;  %v934_v21 = vld [vmem:[%s1666_s3 + $0xf8] sm:$0xff] }
  0x19   : > { %1057 = vmatprep.mubr.msk.f32.mxu0 %vm232_vm1, %v245_v26  ;;  %v235_v34 = vld [vmem:[#allocation2] sm:$0xff]  ;;  %v236_v47 = vld [vmem:[#allocation2 + $0x8] sm:$0xff]  ;;  %1300 = vmatprep.subr.bf16.mxu1 %v1299_v13  ;;  %v1279_v22 = vpack.c.bf16 %v934_v21, %v933_v20  ;;  %v546_v26 = vld [vmem:[%s1666_s3 + $0x70] sm:$0xff] }
  0x1a   : > { %1058 = vmatmul.mubr.msk.f32.vlgmr.msra.gmra.mrb[0].mxu0 %vm232_vm1, %v246_v32  ;;  %v418_v49 = vld [vmem:[#allocation2 + $0x2] sm:$0xff]  ;;  %v419_v61 = vld [vmem:[#allocation2 + $0xa] sm:$0xff]  ;;  %v547_v27 = vld [vmem:[%s1666_s3 + $0x78] sm:$0xff] }
  0x1b   : > { %1222 = vmatpush3.bf16.msra.mxu0 %v1219_v25  ;;  %1076 = vmatprep.mubr.msk.f32.mxu0 %vm232_vm1, %v235_v34  ;;  %v545_v24 = vld [vmem:[%s1666_s3 + $0x68] sm:$0xff]  ;;  %v1311_v28 = vpack.c.bf16 %v547_v27, %v546_v26  ;;  %v935_v29 = vld [vmem:[%s1666_s3 + $0x100] sm:$0xff]  ;;  %v937_v42 = vld [vmem:[%s1666_s3 + $0x110] sm:$0xff] }
  0x1c   : > { %1224 = vmatprep.subr.bf16.mxu0 %v1223_v33  ;;  %1302 = vmatpush3.bf16.msra.mxu1 %v1299_v13  ;;  %v1307_v25 = vpack.c.bf16 %v545_v24, %v544_v23  ;;  %v936_v30 = vld [vmem:[%s1666_s3 + $0x108] sm:$0xff]  ;;  %v917_v32 = vld [vmem:[%s1665_s2] ss:$0 sm:$0xff]  ;;  %v918_v34 = vld [vmem:[%s1665_s2 + $0x1] ss:$0 sm:$0xff] }
  0x1d   : > { %1304 = vmatprep.subr.bf16.mxu1 %v1303_v19  ;;  %v1315_v31 = vpack.c.bf16 %v936_v30, %v935_v29  ;;  %v938_v43 = vld [vmem:[%s1666_s3 + $0x118] sm:$0xff]  ;;  %v941_v51 = vld [vmem:[%s1666_s3 + $0x130] sm:$0xff]  ;;  %v943_v54 = vld [vmem:[%s1666_s3 + $0x140] sm:$0xff] }
  0x1e   : > { %v1319_v46 = vpack.c.bf16 %v938_v43, %v937_v42  ;;  %v945_v57 = vld [vmem:[%s1666_s3 + $0x150] sm:$0xff]  ;;  %v947_v60 = vld [vmem:[%s1666_s3 + $0x160] sm:$0xff]  ;;  %v950_v0 = vld [vmem:[%s1666_s3 + $0x178] sm:$0xff] }
  0x1f   : > { %1226 = vmatpush3.bf16.msra.mxu0 %v1223_v33  ;;  %v949_v63 = vld [vmem:[%s1666_s3 + $0x170] sm:$0xff]  ;;  %v951_v6 = vld [vmem:[%s1667_s4] ss:$0 sm:$0xff]  ;;  %v952_v9 = vld [vmem:[%s1667_s4 + $0x1] ss:$0 sm:$0xff] }
  0x20   : > { %1228 = vmatprep.subr.bf16.mxu0 %v1227_v38  ;;  %1306 = vmatpush3.bf16.msra.mxu1 %v1303_v19 }
  0x21   : > { %1308 = vmatprep.subr.bf16.mxu1 %v1307_v25 }
  0x23   : > { %1230 = vmatpush3.bf16.msra.mxu0 %v1227_v38 }
  0x24   : > { %1232 = vmatprep.subr.bf16.mxu0 %v1231_v41  ;;  %1310 = vmatpush3.bf16.msra.mxu1 %v1307_v25 }
  0x25   : > { %1312 = vmatprep.subr.bf16.mxu1 %v1311_v28 }
  0x27   : > { %1234 = vmatpush3.bf16.msra.mxu0 %v1231_v41 }
  0x28   : > { %1236 = vmatprep.subr.bf16.mxu0 %v1235_v44  ;;  %1314 = vmatpush3.bf16.msra.mxu1 %v1311_v28 }
  0x29   : > { %1316 = vmatprep.subr.bf16.mxu1 %v1315_v31 }
  0x2a   : > { %1077 = vmatmul.mubr.msk.f32.vlgmr.msra.gmra.mrb[0].mxu0 %vm232_vm1, %v236_v47  ;;  %v939_v47 = vld [vmem:[%s1666_s3 + $0x120] sm:$0xff] }
  0x2b   : > { %1238 = vmatpush3.bf16.msra.mxu0 %v1235_v44  ;;  %1095 = vmatprep.mubr.msk.f32.mxu0 %vm232_vm1, %v418_v49 }
  0x2c   : > { %1240 = vmatprep.subr.bf16.mxu0 %v1239_v48 }
  0x2f   : > { %1242 = vmatpush3.bf16.msra.mxu0 %v1239_v48  ;;  %v940_v48 = vld [vmem:[%s1666_s3 + $0x128] sm:$0xff] }
  0x30   : > { %1244 = vmatprep.subr.bf16.mxu0 %v1243_v52  ;;  %v1323_v50 = vpack.c.bf16 %v940_v48, %v939_v47 }
  0x33   : > { %1246 = vmatpush3.bf16.msra.mxu0 %v1243_v52  ;;  %v942_v52 = vld [vmem:[%s1666_s3 + $0x138] sm:$0xff] }
  0x34   : > { %1248 = vmatprep.subr.bf16.mxu0 %v1247_v55  ;;  %v1327_v53 = vpack.c.bf16 %v942_v52, %v941_v51 }
  0x37   : > { %1250 = vmatpush3.bf16.msra.mxu0 %v1247_v55  ;;  %v944_v55 = vld [vmem:[%s1666_s3 + $0x148] sm:$0xff] }
  0x38   : > { %1252 = vmatprep.subr.bf16.mxu0 %v1251_v58  ;;  %v1331_v56 = vpack.c.bf16 %v944_v55, %v943_v54 }
  0x3a   : > { %1096 = vmatmul.mubr.msk.f32.vlgmr.msra.gmra.mrb[0].mxu0 %vm232_vm1, %v419_v61  ;;  %v948_v61 = vld [vmem:[%s1666_s3 + $0x168] sm:$0xff] }
  0x3b   : > { %1254 = vmatpush3.bf16.msra.mxu0 %v1251_v58  ;;  %v946_v58 = vld [vmem:[%s1666_s3 + $0x158] sm:$0xff] }
  0x3c   : > { %1256 = vmatprep.subr.bf16.mxu0 %v1255_v62  ;;  %v1335_v59 = vpack.c.bf16 %v946_v58, %v945_v57 }
  0x3f   : > { %1258 = vmatpush3.bf16.msra.mxu0 %v1255_v62  ;;  %v1339_v62 = vpack.c.bf16 %v948_v61, %v947_v60 }
  0x40   : > { %1260 = vmatprep.subr.bf16.mxu0 %v1259_v1 }
  0x43   : > { %1262 = vmatpush3.bf16.msra.mxu0 %v1259_v1  ;;  %v1343_v1 = vpack.c.bf16 %v950_v0, %v949_v63 }
  0x44   : > { %1264 = vmatprep.subr.bf16.mxu0 %v1263_v4 }
  0x47   : > { %1266 = vmatpush3.bf16.msra.mxu0 %v1263_v4 }
  0x48   : > { %1268 = vmatprep.subr.bf16.mxu0 %v1267_v7 }
  0x4b   : > { %1270 = vmatpush3.bf16.msra.mxu0 %v1267_v7 }
  0x4c   : > { %1272 = vmatprep.subr.bf16.mxu0 %v1271_v10 }
  0x4f   : > { %1274 = vmatpush3.bf16.msra.mxu0 %v1271_v10 }
  0x50   : > { %1276 = vmatprep.subr.bf16.mxu0 %v1275_v16 }
  0x53   : > { %1278 = vmatpush3.bf16.msra.mxu0 %v1275_v16 }
  0x54   : > { %1280 = vmatprep.subr.bf16.mxu0 %v1279_v22 }
  0x57   : > { %1282 = vmatpush3.bf16.msra.mxu0 %v1279_v22 }
 0x10d   : > { %v1097_v33 = vpop.f32.mrb[0].mxu0 }
 0x10e   : > { %v519_v35 = vmul.f32 %v1097_v33, %v917_v32  ;;  %v501_v36 = vpop.f32.mrb[1].mxu0 }
 0x10f   : > { %v518_v37 = vmul.f32 %v917_v32, %v501_v36 }
 0x110   : > { %v525_v38 = vadd.f32 %v918_v34, %v519_v35 }
 0x111   : > { %v524_v39 = vadd.f32 %v918_v34, %v518_v37 }
 0x112   : > { %v527_v40 = vmax.f32 %v525_v38, 0.0 }
 0x113   : > { %v526_v41 = vmax.f32 %v524_v39, 0.0 }
 0x114   : > { %529 = vst [vmem:[#allocation3 + $0x9] sm:$0xff] %v527_v40 }
 0x115   : > { %528 = vst [vmem:[#allocation3 + $0x1] sm:$0xff] %v526_v41  ;;  %1130 = vmatprep.mubr.f32.mxu0 %v526_v41 }
 0x116   : > { %1131 = vmatmul.mubr.f32.vlgmr.msra.gmra.mrb[2].mxu0 %v527_v40 }
 0x11b   : > { %v718_v2 = vld [vmem:[#allocation3 + $0xa] sm:$0xff] }
 0x11c   : > { %v530_v44 = vld [vmem:[#allocation3] sm:$0xff]  ;;  %v531_v45 = vld [vmem:[#allocation3 + $0x8] sm:$0xff] }
 0x11d   : > { %1165 = vmatprep.mubr.f32.mxu1 %v530_v44  ;;  %v717_v49 = vld [vmem:[#allocation3 + $0x2] sm:$0xff] }
 0x11e   : > { %1166 = vmatmul.mubr.f32.vlgmr.msra.gmra.mrb[0].mxu1 %v531_v45 }
 0x11f   : > { %1318 = vmatpush3.bf16.msra.mxu1 %v1315_v31  ;;  %1200 = vmatprep.mubr.f32.mxu1 %v717_v49 }
 0x120   : > { %1320 = vmatprep.subr.bf16.mxu1 %v1319_v46 }
 0x123   : > { %1322 = vmatpush3.bf16.msra.mxu1 %v1319_v46 }
 0x124   : > { %1324 = vmatprep.subr.bf16.mxu1 %v1323_v50 }
 0x127   : > { %1326 = vmatpush3.bf16.msra.mxu1 %v1323_v50 }
 0x128   : > { %1328 = vmatprep.subr.bf16.mxu1 %v1327_v53 }
 0x12b   : > { %1330 = vmatpush3.bf16.msra.mxu1 %v1327_v53 }
 0x12c   : > { %1332 = vmatprep.subr.bf16.mxu1 %v1331_v56 }
 0x12f   : > { %1334 = vmatpush3.bf16.msra.mxu1 %v1331_v56 }
 0x130   : > { %1336 = vmatprep.subr.bf16.mxu1 %v1335_v59 }
 0x133   : > { %1338 = vmatpush3.bf16.msra.mxu1 %v1335_v59 }
 0x134   : > { %1340 = vmatprep.subr.bf16.mxu1 %v1339_v62 }
 0x137   : > { %1342 = vmatpush3.bf16.msra.mxu1 %v1339_v62 }
 0x138   : > { %1344 = vmatprep.subr.bf16.mxu1 %v1343_v1 }
 0x13b   : > { %1346 = vmatpush3.bf16.msra.mxu1 %v1343_v1 }
 0x13e   : > { %1201 = vmatmul.mubr.f32.vlgmr.msra.gmra.mrb[0].mxu1 %v718_v2 }
 0x1e9   : > { %v1132_v3 = vpop.f32.mrb[2].mxu0 }
 0x1ea   : > { %v633_v4 = vpop.f32.mrb[3].mxu0 }
 0x211   : > { %v1202_v5 = vpop.f32.mrb[0].mxu1 }
 0x212   : > { %v1347_v7 = vadd.f32 %v1202_v5, %v1132_v3  ;;  %v802_v8 = vpop.f32.mrb[1].mxu1 }
 0x213   : > { %v1348_v10 = vadd.f32 %v802_v8, %v633_v4 }
 0x214   : > { %v820_v11 = vmul.f32 %v1347_v7, %v951_v6 }
 0x215   : > { %v819_v12 = vmul.f32 %v1348_v10, %v951_v6 }
 0x216   : > { %v826_v13 = vadd.f32 %v952_v9, %v820_v11 }
 0x217   : > { %v825_v14 = vadd.f32 %v952_v9, %v819_v12 }
 0x218   : > { %v828_v15 = vmax.f32 %v826_v13, 0.0 }
 0x219   : > { %v827_v16 = vmax.f32 %v825_v14, 0.0 }
 0x21a   : > { %830 = vst [vmem:[%s224_s23 + $0x8] sm:$0xff] %v828_v15 }
 0x21b   : > { %829 = vst [vmem:[%s224_s23] sm:$0xff] %v827_v16 }
 0x21c PF: > { %s15_s18 = sadd.s32 1, %s1370_s18  }
 0x21d   : > { %p12_p4 = scmp.ge.s32.totalorder %s15_s18, 4  }
 0x21f   :  { %14 = sbr.rel (!%p12_p4) target bundleno = 1 (0x1), region = 74 }

</bundles_post_ra>
